<compile_context>
chip_gen: v6e
topology: v6e:2x2x1
jax: 0.10.0
libtpu: 0.0.40
codegen_flags: <defaults>
</compile_context>

<pallas_src>
import functools

import jax
import jax.numpy as jnp
from jax.experimental import pallas as pl
from jax.experimental.pallas import tpu as pltpu

EPS = 1e-6


def _shifted(x, delta, axis, use_roll):
    """Zero-filled shift: result[..., k, ...] = x[..., k - delta, ...] along
    `axis`; positions whose source index falls outside [0, size) become 0.
    This reproduces the 1-pixel zero padding of F.conv2d(padding=1)."""
    size = x.shape[axis]
    if use_roll:
        # XLU lane/sublane rotate (off the VALU/vld critical path); wrapped
        # entries are masked to zero.
        idx = jax.lax.broadcasted_iota(jnp.int32, x.shape, axis)
        rolled = pltpu.roll(x, delta % size, axis)
        if delta > 0:
            return jnp.where(idx < delta, 0.0, rolled)
        return jnp.where(idx >= size + delta, 0.0, rolled)
    # Fallback for lane/sublane-misaligned tiles (e.g. tiny unit-test shapes):
    # static slice + concatenate with an explicit zero strip (always lowers).
    if axis == 0:
        zeros = jnp.zeros((abs(delta),) + x.shape[1:], x.dtype)
        if delta > 0:
            return jnp.concatenate([zeros, x[:-delta, :]], axis=0)
        return jnp.concatenate([x[-delta:, :], zeros], axis=0)
    zeros = jnp.zeros(x.shape[:-1] + (abs(delta),), x.dtype)
    if delta > 0:
        return jnp.concatenate([zeros, x[:, :-delta]], axis=1)
    return jnp.concatenate([x[:, -delta:], zeros], axis=1)


def _loss_kernel(d_ref, e_ref, out_ref, acc_ref, *, eps, inv_n, use_roll):
    b = pl.program_id(0)

    @pl.when(b == 0)
    def _init():
        acc_ref[0, 0] = jnp.float32(0.0)

    d = d_ref[...]                               # (H, W) f32 depth tile
    e = e_ref[...].astype(jnp.float32)           # (H, W) bf16 -> f32 edge tile

    # Separable Sobel (cross-correlation, zero padding):
    #   t_sum[i,j] = d[i-1,j] + 2*d[i,j] + d[i+1,j]
    #   t_dif[i,j] = d[i-1,j] - d[i+1,j]
    #   gx[i,j] = (t_sum[i,j-1] - t_sum[i,j+1]) / 8
    #   gy[i,j] = (t_dif[i,j-1] + 2*t_dif[i,j] + t_dif[i,j+1]) / 8
    r_up = _shifted(d, 1, 0, use_roll)           # d[i-1, j]  (0 at i == 0)
    r_dn = _shifted(d, -1, 0, use_roll)          # d[i+1, j]  (0 at i == H-1)
    t_sum = r_up + 2.0 * d + r_dn
    t_dif = r_up - r_dn

    ts_l = _shifted(t_sum, 1, 1, use_roll)       # t_sum[i, j-1]
    ts_r = _shifted(t_sum, -1, 1, use_roll)      # t_sum[i, j+1]
    td_l = _shifted(t_dif, 1, 1, use_roll)
    td_r = _shifted(t_dif, -1, 1, use_roll)

    gx = (ts_l - ts_r) * 0.125
    gy = (td_l + 2.0 * t_dif + td_r) * 0.125

    grad_mag = jnp.sqrt(gx * gx + gy * gy + eps)
    acc_ref[0, 0] += jnp.sum((1.0 - e) * grad_mag)

    @pl.when(b == pl.num_programs(0) - 1)
    def _finalize():
        out_ref[0, 0] = acc_ref[0, 0] * inv_n


def depth_edge_coupling_loss(depth, edge, eps=EPS):
    """depth, edge: (B, 1, H, W) (NCHW, like the PyTorch module). Scalar f32 loss."""
    B, C, H, W = depth.shape
    assert C == 1 and edge.shape == depth.shape

    d = depth.reshape(B, H, W).astype(jnp.float32)
    # Binary 0/1 edge mask is exact in bf16 -> halves its HBM read traffic.
    e = edge.reshape(B, H, W).astype(jnp.bfloat16)

    # Only use XLU rotates when the tile is natively lane/sublane aligned;
    # otherwise fall back to slice+concat shifts (e.g. the tiny unit test).
    # TODO(synk): for W << 128, fold B*H into the sublane dim with a lane-padded
    # (B*H, 128) view + batch-seam masks to keep vregs dense.
    use_roll = (H % 8 == 0) and (W % 128 == 0)

    # VMEM budget: double-buffered input tiles + in-kernel f32 temporaries,
    # capped well under v7x's 64 MiB physical VMEM.
    per_step_in = H * W * (4 + 2)          # depth f32 + edge bf16 per grid step
    temporaries = 10 * H * W * 4           # shifted/intermediate f32 tiles
    vmem_limit = int(min(max(2 * per_step_in + temporaries + (2 << 20), 16 << 20),
                         48 << 20))
    # TODO(synk): if one (H, W) frame no longer fits this budget, add a row-tile
    # grid axis with a 1-row halo exchange (Element-indexed windows or carried
    # boundary rows).
    # TODO(synk): on v7x, split the batch axis into per-core partial sums
    # (parallel dimension_semantics) summed in the wrapper to use both
    # TensorCores; the single SMEM accumulator below serializes the grid.

    kernel = functools.partial(
        _loss_kernel, eps=float(eps), inv_n=1.0 / float(B * H * W),
        use_roll=use_roll)

    out = pl.pallas_call(
        kernel,
        grid=(B,),
        in_specs=[
            pl.BlockSpec((None, H, W), lambda b: (b, 0, 0)),   # depth tile
            pl.BlockSpec((None, H, W), lambda b: (b, 0, 0)),   # edge tile
        ],
        out_specs=pl.BlockSpec((1, 1), lambda b: (0, 0),
                               memory_space=pltpu.MemorySpace.SMEM),
        out_shape=jax.ShapeDtypeStruct((1, 1), jnp.float32),
        scratch_shapes=[pltpu.SMEM((1, 1), jnp.float32)],
        compiler_params=pltpu.CompilerParams(
            dimension_semantics=("arbitrary",),
            vmem_limit_bytes=vmem_limit,
        ),
    )(d, e)
    return out[0, 0]


def _reference_jax(depth, edge, eps=EPS):
    """Pure-JAX reference (zero-padded 9-tap Sobel, independent formulation)."""
    B, _, H, W = depth.shape
    d = depth.reshape(B, H, W).astype(jnp.float32)
    e = edge.reshape(B, H, W).astype(jnp.float32)
    dp = jnp.pad(d, ((0, 0), (1, 1), (1, 1)))
    sl = lambda m, n: dp[:, m:m + H, n:n + W]
    gx = (sl(0, 0) + 2 * sl(1, 0) + sl(2, 0)
          - sl(0, 2) - 2 * sl(1, 2) - sl(2, 2)) / 8.0
    gy = (sl(0, 0) + 2 * sl(0, 1) + sl(0, 2)
          - sl(2, 0) - 2 * sl(2, 1) - sl(2, 2)) / 8.0
    gm = jnp.sqrt(gx * gx + gy * gy + eps)
    return jnp.mean((1.0 - e) * gm)


if __name__ == "__main__":
    B, C, H, W = 4, 1, 16, 16
    key = jax.random.PRNGKey(0)
    k_depth, k_edge = jax.random.split(key)

    depth = jax.random.uniform(k_depth, (B, C, H, W), dtype=jnp.float32) * 5.0
    edge = (jax.random.uniform(k_edge, (B, C, H, W)) > 0.8).astype(jnp.float32)

    loss = depth_edge_coupling_loss(depth, edge)
    loss = jax.block_until_ready(loss)

    ref = _reference_jax(depth, edge)
    assert jnp.allclose(loss, ref, rtol=1e-5, atol=1e-6), (loss, ref)

    print("KERNEL_OK")
</pallas_src>

<mosaic_0001>
module attributes {stable_mosaic.version = 11 : i64} {
  func.func @_loss_kernel(%arg0: i32, %arg1: memref<1x16x16xf32, #tpu.memory_space<vmem>>, %arg2: memref<1x16x16xbf16, #tpu.memory_space<vmem>>, %arg3: memref<1x1xf32, #tpu.memory_space<smem>>, %arg4: memref<1x1xf32, #tpu.memory_space<smem>>) attributes {dimension_semantics = [#tpu.dimension_semantics<arbitrary>], iteration_bounds = array<i64: 4>, scalar_prefetch = 0 : i64, scratch_operands = 1 : i64, tpu.core_type = #tpu.core_type<tc>, window_params = [{transform_indices = @transform_0, window_bounds = array<i64: 1, 16, 16>}, {transform_indices = @transform_1, window_bounds = array<i64: 1, 16, 16>}, {transform_indices = @transform_2, window_bounds = array<i64: 1, 1>}]} {
    %c0_i32 = arith.constant 0 : i32
    %0 = arith.cmpi eq, %arg0, %c0_i32 : i32
    %1 = arith.extui %0 : i1 to i32
    %c0_i32_0 = arith.constant 0 : i32
    %2 = arith.cmpi ne, %1, %c0_i32_0 : i32
    scf.if %2 {
      %cst_23 = arith.constant 0.000000e+00 : f32
      %c0_24 = arith.constant 0 : index
      %c0_25 = arith.constant 0 : index
      %59 = memref.load %arg4[%c0_24, %c0_25] : memref<1x1xf32, #tpu.memory_space<smem>>
      memref.store %cst_23, %arg4[%c0_24, %c0_25] : memref<1x1xf32, #tpu.memory_space<smem>>
    } else {
    }
    %c0 = arith.constant 0 : index
    %c0_1 = arith.constant 0 : index
    %c0_2 = arith.constant 0 : index
    %3 = vector.load %arg1[%c0, %c0_1, %c0_2] : memref<1x16x16xf32, #tpu.memory_space<vmem>>, vector<1x16x16xf32>
    %4 = vector.shape_cast %3 : vector<1x16x16xf32> to vector<16x16xf32>
    %c0_3 = arith.constant 0 : index
    %c0_4 = arith.constant 0 : index
    %c0_5 = arith.constant 0 : index
    %5 = vector.load %arg2[%c0_3, %c0_4, %c0_5] : memref<1x16x16xbf16, #tpu.memory_space<vmem>>, vector<1x16x16xbf16>
    %6 = vector.shape_cast %5 : vector<1x16x16xbf16> to vector<16x16xbf16>
    %7 = arith.extf %6 : vector<16x16xbf16> to vector<16x16xf32>
    %cst = arith.constant 0.000000e+00 : f32
    %8 = vector.broadcast %cst : f32 to vector<1x16xf32>
    %9 = vector.extract_strided_slice %4 {offsets = [0, 0], sizes = [15, 16], strides = [1, 1]} : vector<16x16xf32> to vector<15x16xf32>
    %10 = tpu.concatenate %8, %9 in 0 : vector<1x16xf32>, vector<15x16xf32> -> vector<16x16xf32>
    %cst_6 = arith.constant 0.000000e+00 : f32
    %11 = vector.broadcast %cst_6 : f32 to vector<1x16xf32>
    %12 = vector.extract_strided_slice %4 {offsets = [1, 0], sizes = [15, 16], strides = [1, 1]} : vector<16x16xf32> to vector<15x16xf32>
    %13 = tpu.concatenate %12, %11 in 0 : vector<15x16xf32>, vector<1x16xf32> -> vector<16x16xf32>
    %cst_7 = arith.constant 2.000000e+00 : f32
    %14 = vector.broadcast %cst_7 : f32 to vector<16x16xf32>
    %15 = arith.mulf %14, %4 : vector<16x16xf32>
    %16 = arith.addf %10, %15 : vector<16x16xf32>
    %17 = arith.addf %16, %13 : vector<16x16xf32>
    %18 = arith.subf %10, %13 : vector<16x16xf32>
    %cst_8 = arith.constant 0.000000e+00 : f32
    %19 = vector.broadcast %cst_8 : f32 to vector<16x1xf32>
    %20 = vector.extract_strided_slice %17 {offsets = [0, 0], sizes = [16, 15], strides = [1, 1]} : vector<16x16xf32> to vector<16x15xf32>
    %21 = tpu.concatenate %19, %20 in 1 : vector<16x1xf32>, vector<16x15xf32> -> vector<16x16xf32>
    %cst_9 = arith.constant 0.000000e+00 : f32
    %22 = vector.broadcast %cst_9 : f32 to vector<16x1xf32>
    %23 = vector.extract_strided_slice %17 {offsets = [0, 1], sizes = [16, 15], strides = [1, 1]} : vector<16x16xf32> to vector<16x15xf32>
    %24 = tpu.concatenate %23, %22 in 1 : vector<16x15xf32>, vector<16x1xf32> -> vector<16x16xf32>
    %cst_10 = arith.constant 0.000000e+00 : f32
    %25 = vector.broadcast %cst_10 : f32 to vector<16x1xf32>
    %26 = vector.extract_strided_slice %18 {offsets = [0, 0], sizes = [16, 15], strides = [1, 1]} : vector<16x16xf32> to vector<16x15xf32>
    %27 = tpu.concatenate %25, %26 in 1 : vector<16x1xf32>, vector<16x15xf32> -> vector<16x16xf32>
    %cst_11 = arith.constant 0.000000e+00 : f32
    %28 = vector.broadcast %cst_11 : f32 to vector<16x1xf32>
    %29 = vector.extract_strided_slice %18 {offsets = [0, 1], sizes = [16, 15], strides = [1, 1]} : vector<16x16xf32> to vector<16x15xf32>
    %30 = tpu.concatenate %29, %28 in 1 : vector<16x15xf32>, vector<16x1xf32> -> vector<16x16xf32>
    %31 = arith.subf %21, %24 : vector<16x16xf32>
    %cst_12 = arith.constant 1.250000e-01 : f32
    %32 = vector.broadcast %cst_12 : f32 to vector<16x16xf32>
    %33 = arith.mulf %31, %32 : vector<16x16xf32>
    %cst_13 = arith.constant 2.000000e+00 : f32
    %34 = vector.broadcast %cst_13 : f32 to vector<16x16xf32>
    %35 = arith.mulf %34, %18 : vector<16x16xf32>
    %36 = arith.addf %27, %35 : vector<16x16xf32>
    %37 = arith.addf %36, %30 : vector<16x16xf32>
    %cst_14 = arith.constant 1.250000e-01 : f32
    %38 = vector.broadcast %cst_14 : f32 to vector<16x16xf32>
    %39 = arith.mulf %37, %38 : vector<16x16xf32>
    %40 = arith.mulf %33, %33 : vector<16x16xf32>
    %41 = arith.mulf %39, %39 : vector<16x16xf32>
    %42 = arith.addf %40, %41 : vector<16x16xf32>
    %cst_15 = arith.constant 9.99999997E-7 : f32
    %43 = vector.broadcast %cst_15 : f32 to vector<16x16xf32>
    %44 = arith.addf %42, %43 : vector<16x16xf32>
    %45 = math.sqrt %44 : vector<16x16xf32>
    %c0_16 = arith.constant 0 : index
    %c0_17 = arith.constant 0 : index
    %46 = memref.load %arg4[%c0_16, %c0_17] : memref<1x1xf32, #tpu.memory_space<smem>>
    %cst_18 = arith.constant 1.000000e+00 : f32
    %47 = vector.broadcast %cst_18 : f32 to vector<16x16xf32>
    %48 = arith.subf %47, %7 : vector<16x16xf32>
    %49 = arith.mulf %48, %45 : vector<16x16xf32>
    %50 = vector.shape_cast %49 : vector<16x16xf32> to vector<1x16x16xf32>
    %cst_19 = arith.constant dense<0.000000e+00> : vector<1xf32>
    %51 = vector.multi_reduction <add>, %50, %cst_19 [1, 2] : vector<1x16x16xf32> to vector<1xf32>
    %52 = vector.shape_cast %51 : vector<1xf32> to vector<1x1x1xf32>
    %53 = vector.extract %52[0, 0, 0] : f32 from vector<1x1x1xf32>
    %54 = arith.addf %46, %53 : f32
    %c0_20 = arith.constant 0 : index
    %c0_21 = arith.constant 0 : index
    %55 = memref.load %arg4[%c0_20, %c0_21] : memref<1x1xf32, #tpu.memory_space<smem>>
    memref.store %54, %arg4[%c0_20, %c0_21] : memref<1x1xf32, #tpu.memory_space<smem>>
    %c3_i32 = arith.constant 3 : i32
    %56 = arith.cmpi eq, %arg0, %c3_i32 : i32
    %57 = arith.extui %56 : i1 to i32
    %c0_i32_22 = arith.constant 0 : i32
    %58 = arith.cmpi ne, %57, %c0_i32_22 : i32
    scf.if %58 {
      %c0_23 = arith.constant 0 : index
      %c0_24 = arith.constant 0 : index
      %59 = memref.load %arg4[%c0_23, %c0_24] : memref<1x1xf32, #tpu.memory_space<smem>>
      %cst_25 = arith.constant 9.765625E-4 : f32
      %60 = arith.mulf %59, %cst_25 : f32
      %c0_26 = arith.constant 0 : index
      %c0_27 = arith.constant 0 : index
      %61 = memref.load %arg3[%c0_26, %c0_27] : memref<1x1xf32, #tpu.memory_space<smem>>
      memref.store %60, %arg3[%c0_26, %c0_27] : memref<1x1xf32, #tpu.memory_space<smem>>
    } else {
    }
    return
  }
  func.func @transform_0(%arg0: i32) -> (i32, i32, i32) {
    %c0_i32 = arith.constant 0 : i32
    %c0_i32_0 = arith.constant 0 : i32
    %c0_i32_1 = arith.constant 0 : i32
    return %arg0, %c0_i32, %c0_i32_0 : i32, i32, i32
  }
  func.func @transform_1(%arg0: i32) -> (i32, i32, i32) {
    %c0_i32 = arith.constant 0 : i32
    %c0_i32_0 = arith.constant 0 : i32
    %c0_i32_1 = arith.constant 0 : i32
    return %arg0, %c0_i32, %c0_i32_0 : i32, i32, i32
  }
  func.func @transform_2(%arg0: i32) -> (i32, i32) {
    %c0_i32 = arith.constant 0 : i32
    %c0_i32_0 = arith.constant 0 : i32
    %c0_i32_1 = arith.constant 0 : i32
    return %c0_i32, %c0_i32_0 : i32, i32
  }
}

</mosaic_0001>

<bundles_post_ra>
// kernel: tpu_custom_call.1
= control target key start
LH: loop header
LB: loop body
LE: loop exit
PB: predicated region body
PF: predicated region fallthrough
CT: control target
= control target key end

     0   :  { %7 = vsyncpa [#allocation4], 0  ;;  %s803_s0 = inlined_call_operand.hbm [shape: f32[4,16,16], index: 0, kind: input, shape index: {}]   ;;  %s804_s1 = inlined_call_operand.hbm [shape: bf16[4,16,16], index: 1, kind: input, shape index: {}]   ;;  %s805_s2 = inlined_call_operand.hbm [shape: f32[1,1], index: 2, kind: output, shape index: {}]  }
   0x1   :  { %9 = vsyncpa [#allocation4 + $0x1], 0 }
   0x2   :  { %10 = vsyncpa [#allocation7], 0 }
   0x3   :  { %12 = vsyncpa [#allocation7 + $0x1], 0 }
   0x4   :  { %13 = vsyncpa [#allocation5], 0  ;;  %s635_s9 = smov 0   ;;  %s637_s10 = smov 0  }
   0x5   :  { %s639_s11 = smov 0   ;;  %s641_s12 = smov 0  }
   0x6 LB: > { %s406_s13 = sadd.s32 4294967295, %s608_s12   ;;  %s655_s14 = sadd.s32 1, %s608_s12   ;;  %s608_s12 = sphi %s641_s12, %s818_s12   ;;  %s604_s11 = sphi %s639_s11, %s817_s11   ;;  %s600_s10 = sphi %s637_s10, %s816_s10   ;;  %s596_s9 = sphi %s635_s9, %s815_s9  }
   0x7   : > { %s23_s15 = ssub.s32 %s608_s12, %s655_s14  ;;  %s26_s16 = sadd.s32 1, %s604_s11 }
   0x8   : > { %p24_p0 = scmp.eq.s32.totalorder %s23_s15, 0  ;;  %p33_p1 = scmp.ne.s32.totalorder %s604_s11, %s600_s10 }
   0x9   : > { %p34_p2 = scmp.eq.s32.totalorder %s608_s12, 0  ;;  %p39_p3 = scmp.ne.s32.totalorder %s600_s10, %s596_s9 }
   0xa   : > { %s665_s17 = scalar_select %p24_p0, %s604_s11, %s26_s16  }
   0xb   : > { %p35_p4 = por %p34_p2, %p33_p1  ;;  %p669_p5 = scmp.eq.s32.totalorder %s406_s13, 0 }
   0xc   : > { %p451_p6 = scmp.lt.s32.totalorder %s608_s12, 4  ;;  %s681_s20 = sand.u32 1, %s604_s11  }
   0xd   : > { %s808_s18 = scalar_select %p669_p5, 1, 0 }
   0xe   : > { %p676_p7 = por %p669_p5, %p39_p3  ;;  %s409_s21 = sshll.u32 %s681_s20, 4 }
   0xf   : > { %s424_s22 = sshll.u32 %s608_s12, 8  ;;  %s114_s26 = scalar_lea.vmem [#allocation3], %s409_s21 }
  0x10   : > { %s809_s19 = scalar_select %p676_p7, 1, 0 }
  0x11   : > { %s688_s25 = scalar_lea.hbm %s803_s0, %s424_s22  ;;  %s121_s27 = sshll.u32 %s114_s26, 4  ;;  %s690_s27 = int_to_ptr.vmem [resolvable:$true] %s121_s27 }
  0x12   : > { %p692_p8 = pnand %p451_p6, %p35_p4  ;;  %s111_s29 = scalar_lea.sflag [#allocation4], %s681_s20 }
  0x13   : > { %s500_s30 = scalar_lea.hbm %s688_s25, 256  ;;  %s505_s5 = scalar_lea.hbm %s803_s0, 1024 }
  0x14   : > { %p501_p10 = scmp.ne.s32.totalorder %s688_s25, %s500_s30  ;;  %p502_p11 = pneg %p692_p8 }
  0x15   : > { %p506_p0 = scmp.lt.s32.totalorder %s688_s25, %s803_s0  ;;  %p507_p1 = scmp.lt.s32.totalorder %s505_s5, %s500_s30 }
  0x16   : > { %p503_p12 = pnand %p502_p11, %p501_p10 }
  0x17   : > { %p508_p2 = por %p507_p1, %p506_p0 }
  0x18   : > { %p504_p13 = pneg %p503_p12 }
  0x1a   : > { %p509_p3 = pnand %p508_p2, %p504_p13 }
  0x1c   : > { %512 = shalt.err (!%p509_p3)
}
  0x1d   : > { %s513_s8 = scalar_lea.vmem %s690_s27, 256  ;;  %s610_s9 = smov [#allocation3]  }
  0x1e   : > { %p514_p4 = scmp.ne.s32.totalorder %s690_s27, %s513_s8  ;;  %s518_s15 = sshll.u32 %s610_s9, 4  ;;  %s519_s15 = int_to_ptr.vmem [resolvable:$false] %s518_s15 }
  0x1f   : > { %s520_s16 = scalar_lea.vmem %s519_s15, 512  ;;  %p521_p12 = scmp.lt.s32.totalorder %s690_s27, %s519_s15 }
  0x20   : > { %p516_p6 = pnand %p514_p4, %p502_p11  ;;  %p522_p9 = scmp.lt.s32.totalorder %s520_s16, %s513_s8 }
  0x22   : > { %p517_p10 = pneg %p516_p6  ;;  %p523_p5 = por %p522_p9, %p521_p12 }
  0x24   : > { %p524_p0 = pnand %p523_p5, %p517_p10 }
  0x26   : > { %527 = shalt.err (!%p524_p0)
}
  0x27   : > { %s611_s21 = smov 128   ;;  %s612_s22 = smov 8  }
  0x28   : > { %447 = dma.hbm_to_vmem [thread:$0]  (!%p692_p8), %s688_s25, 256, %s690_s27, %s111_s29, %s611_s21, %s611_s21, %s612_s22  }
  0x29   : > { %p150_p13 = scmp.lt.s32.totalorder %s608_s12, 5  ;;  %s412_s23 = sshll.u32 %s681_s20, 3 }
  0x2a   : > { %s425_s24 = sshll.u32 %s608_s12, 7  ;;  %p811_p5 = scmp.ge.s32.totalorder %s608_s12, 1 }
  0x2b   : > { %s736_s4 = scalar_lea.hbm %s804_s1, %s425_s24  ;;  %s135_s5 = scalar_lea.vmem [#allocation6], %s412_s23 }
  0x2c   : > { %p729_p9 = pnand %p811_p5, %p150_p13  ;;  %s142_s6 = sshll.u32 %s135_s5, 4  ;;  %s738_s6 = int_to_ptr.vmem [resolvable:$true] %s142_s6 }
  0x2d   : > { %s132_s25 = scalar_lea.sflag [#allocation7], %s681_s20  ;;  %s528_s27 = scalar_lea.hbm %s736_s4, 128 }
  0x2e   : > { %p529_p1 = scmp.ne.s32.totalorder %s736_s4, %s528_s27  ;;  %s533_s8 = scalar_lea.hbm %s804_s1, 512 }
  0x2f   : > { %p534_p4 = scmp.lt.s32.totalorder %s736_s4, %s804_s1  ;;  %p535_p6 = scmp.lt.s32.totalorder %s533_s8, %s528_s27 }
  0x30   : > { %p531_p2 = pnand %p529_p1, %p502_p11 }
  0x31   : > { %p536_p10 = por %p535_p6, %p534_p4 }
  0x32   : > { %p532_p3 = pneg %p531_p2 }
  0x34   : > { %p537_p12 = pnand %p536_p10, %p532_p3 }
  0x36   : > { %540 = shalt.err (!%p537_p12)
}
  0x37   : > { %s541_s16 = scalar_lea.vmem %s738_s6, 128  ;;  %s613_s21 = smov [#allocation6]  }
  0x38   : > { %p542_p0 = scmp.ne.s32.totalorder %s738_s6, %s541_s16  ;;  %s546_s22 = sshll.u32 %s613_s21, 4  ;;  %s547_s22 = int_to_ptr.vmem [resolvable:$false] %s546_s22 }
  0x39   : > { %s548_s23 = scalar_lea.vmem %s547_s22, 256  ;;  %p549_p1 = scmp.lt.s32.totalorder %s738_s6, %s547_s22 }
  0x3a   : > { %p544_p13 = pnand %p542_p0, %p502_p11  ;;  %p550_p2 = scmp.lt.s32.totalorder %s548_s23, %s541_s16 }
  0x3c   : > { %p545_p5 = pneg %p544_p13  ;;  %p551_p7 = por %p550_p2, %p549_p1 }
  0x3e   : > { %p552_p4 = pnand %p551_p7, %p545_p5 }
  0x40   : > { %555 = shalt.err (!%p552_p4)
}
  0x41   : > { %s614_s24 = smov 64   ;;  %s615_s30 = smov 4  }
  0x42   : > { %450 = dma.hbm_to_vmem [thread:$0]  (!%p692_p8), %s736_s4, 128, %s738_s6, %s132_s25, %s614_s24, %s614_s24, %s615_s30  }
  0x43   : > { %154 = sbr.rel (%p729_p9) target bundleno = 454 (0x1c6), region = 28  ;;  %s156_s3 = sand.u32 (!%p729_p9), 1, %s600_s10  }
  0x44   : > { %s416_s5 = sshll.u32 (!%p729_p9), %s156_s3, 4  ;;  %s157_s27 = scalar_lea.sflag (!%p729_p9), [#allocation4], %s156_s3 }
  0x45   : > { %s160_s29 = scalar_lea.vmem (!%p729_p9), [#allocation3], %s416_s5  ;;  %p813_p7 = scmp.ne.s32.totalorder (!%p729_p9), %s809_s19, 0 }
  0x48   : > { %583 = dma.done.wait (%p813_p7), %s157_s27, 256  }
  0x49   : > { %585 = vsyncadd (%p813_p7), %s157_s27, 4294967040  ;;  %s417_s7 = sshll.u32 %s156_s3, 3  ;;  %s166_s8 = scalar_lea.sflag [#allocation7], %s156_s3 }
  0x4a   : > { %s772_s28 = scalar_lea.vmem [#allocation6], %s417_s7 }
  0x4b   : > { %587 = dma.done.wait (%p813_p7), %s166_s8, 128  }
  0x4c   : > { %589 = vsyncadd (%p813_p7), %s166_s8, 4294967168  ;;  %v196_v0 = vld [vmem:[%s160_s29] sm:$0xff]  ;;  %v197_v1 = vld [vmem:[%s160_s29 + $0x8] sm:$0xff]  ;;  %vm204_vm0 = vcmask 1040384   ;;  %vm211_vm1 = vcmask 1046528   ;;  %s616_s20 = smov 1  }
  0x4d   : > { %v205_v2 = vrot.slane %v196_v0, 7  ;;  %v212_v3 = vrot.slane %v196_v0, 1  ;;  %v213_v4 = vrot.slane %v197_v1, 1  ;;  %v218_v5 = vmul.f32 2.0, %v196_v0  ;;  %s617_s19 = smov 127   ;;  %v427_v54 = vld [vmem:[%s772_s28] sm:$0xff]  }
  0x4e   : > { %v206_v6 = vrot.slane %v197_v1, 7  ;;  %v219_v7 = vmul.f32 2.0, %v197_v1  ;;  %vm234_vm2 = vcmask 7168   ;;  %vm243_vm3 = vcmask 121856   ;;  %s618_s26 = smov 0.0   ;;  %p814_p8 = scmp.ne.s32.totalorder %s808_s18, 0 }
  0x4f   : > { %v210_v8 = vsel %vm204_vm0, 0.0, %v205_v2  ;;  %v214_v9 = vsel %vm211_vm1, %v212_v3, %v213_v4  ;;  %v217_v10 = vsel %vm211_vm1, %v213_v4, 0.0  ;;  %v428_v55 = vunpack.c.l.bf16 %v427_v54  ;;  %p453_p11 = scmp.eq.s32.totalorder %s406_s13, 3  ;;  %s619_s15 = smov [#allocation8]  }
  0x50   : > { %v224_v11 = vsub.f32 %v210_v8, %v214_v9  ;;  %v220_v12 = vadd.f32 %v218_v5, %v210_v8  ;;  %v207_v13 = vsel %vm204_vm0, %v205_v2, %v206_v6  ;;  %v429_v56 = vunpack.c.h.bf16 %v427_v54  ;;  %437 = sst [smem:[#allocation2]] (%p814_p8), %s618_s26 }
  0x51   : > { %v221_v14 = vadd.f32 %v219_v7, %v207_v13  ;;  %v225_v16 = vsub.f32 %v207_v13, %v217_v10  ;;  %v299_v59 = vsub.f32 1.0, %v428_v55  ;;  %vm303_vm8 = vcmask 130048   ;;  %s298_s4 = sld [smem:[#allocation2]] }
  0x52   : > { %248 = vrot.lane.b32.xlu0 %v224_v11, %s616_s20  ;;  %v222_v15 = vadd.f32 %v220_v12, %v214_v9  ;;  %v268_v22 = vmul.f32 2.0, %v224_v11  ;;  %v300_v0 = vsub.f32 1.0, %v429_v56 }
  0x53   : > { %v223_v17 = vadd.f32 %v221_v14, %v217_v10  ;;  %v269_v27 = vmul.f32 2.0, %v225_v16 }
  0x54   : > { %228 = vrot.lane.b32.xlu1 %v222_v15, %s616_s20 }
  0x56   : > { %250 = vrot.lane.b32.xlu0 %v225_v16, %s616_s20 }
  0x58   : > { %230 = vrot.lane.b32.xlu1 %v223_v17, %s616_s20 }
  0x5a   : > { %237 = vrot.lane.b32.xlu0 %v222_v15, %s617_s19 }
  0x5c   : > { %239 = vrot.lane.b32.xlu1 %v223_v17, %s617_s19 }
  0x5e   : > { %256 = vrot.lane.b32.xlu0 %v224_v11, %s617_s19 }
  0x60   : > { %258 = vrot.lane.b32.xlu1 %v225_v16, %s617_s19 }
  0xc4   : > { %v249_v18 = vpop.permute.xlu0 %248 }
  0xc5   : > { %v254_v24 = vsel %vm234_vm2, 0.0, %v249_v18 }
  0xc6   : > { %v229_v19 = vpop.permute.xlu1 %228  ;;  %v270_v33 = vadd.f32 %v268_v22, %v254_v24 }
  0xc7   : > { %v235_v25 = vsel %vm234_vm2, 0.0, %v229_v19 }
  0xc8   : > { %v251_v20 = vpop.permute.xlu0 %250 }
  0xc9   : > { %v255_v30 = vsel %vm234_vm2, 0.0, %v251_v20 }
  0xca   : > { %v231_v21 = vpop.permute.xlu1 %230  ;;  %v271_v37 = vadd.f32 %v269_v27, %v255_v30 }
  0xcb   : > { %v236_v31 = vsel %vm234_vm2, 0.0, %v231_v21 }
  0xcc   : > { %v238_v23 = vpop.permute.xlu0 %237 }
  0xcd   : > { %v244_v26 = vsel %vm243_vm3, %v238_v23, 0.0 }
  0xce   : > { %v264_v28 = vsub.f32 %v235_v25, %v244_v26  ;;  %v240_v29 = vpop.permute.xlu1 %239 }
  0xcf   : > { %v245_v32 = vsel %vm243_vm3, %v240_v29, 0.0 }
  0xd0   : > { %v265_v34 = vsub.f32 %v236_v31, %v245_v32  ;;  %v257_v35 = vpop.permute.xlu0 %256  ;;  %v266_v38 = vmul.f32 0.125, %v264_v28 }
  0xd1   : > { %v262_v36 = vsel %vm243_vm3, %v257_v35, 0.0 }
  0xd2   : > { %v272_v39 = vadd.f32 %v270_v33, %v262_v36  ;;  %v259_v40 = vpop.permute.xlu1 %258  ;;  %v267_v42 = vmul.f32 0.125, %v265_v34  ;;  %v276_v45 = vmul.f32 %v266_v38, %v266_v38 }
  0xd3   : > { %v263_v41 = vsel %vm243_vm3, %v259_v40, 0.0 }
  0xd4   : > { %v274_v43 = vmul.f32 0.125, %v272_v39  ;;  %v273_v44 = vadd.f32 %v271_v37, %v263_v41  ;;  %v277_v48 = vmul.f32 %v267_v42, %v267_v42 }
  0xd6   : > { %v278_v46 = vmul.f32 %v274_v43, %v274_v43  ;;  %v275_v47 = vmul.f32 0.125, %v273_v44 }
  0xd8   : > { %v280_v49 = vadd.f32 %v278_v46, %v276_v45  ;;  %v279_v50 = vmul.f32 %v275_v47, %v275_v47 }
  0xda   : > { %v282_v51 = vadd.f32 1e-06, %v280_v49  ;;  %v281_v52 = vadd.f32 %v279_v50, %v277_v48 }
  0xdc   : > { %496 = vrsqrt.f32 %v282_v51  ;;  %v283_v53 = vadd.f32 1e-06, %v281_v52  ;;  %vm286_vm4 = vcmp.eq.f32.partialorder %v282_v51, inf  ;;  %v289_v61 = vand.u32 2147483648, %v282_v51 }
  0xdd   : > { %vm288_vm5 = vcmp.eq.f32.partialorder %v282_v51, 0.0 }
  0xde   : > { %498 = vrsqrt.f32 %v283_v53  ;;  %vm293_vm6 = vcmp.eq.f32.partialorder %v283_v53, inf  ;;  %v296_v2 = vand.u32 2147483648, %v283_v53  ;;  %vm295_vm7 = vcmp.eq.f32.partialorder %v283_v53, 0.0 }
  0xe9   : > { %v497_v57 = vpop.eup %496 }
  0xea   : > { %v285_v58 = vmul.f32 %v497_v57, %v282_v51 }
  0xeb   : > { %v499_v60 = vpop.eup %498 }
  0xec   : > { %v287_v62 = vsel %vm286_vm4, %v282_v51, %v285_v58  ;;  %v292_v63 = vmul.f32 %v499_v60, %v283_v53 }
  0xed   : > { %v290_v1 = vsel %vm288_vm5, %v289_v61, %v287_v62 }
  0xee   : > { %v294_v3 = vsel %vm293_vm6, %v283_v53, %v292_v63  ;;  %v301_v4 = vmul.f32 %v299_v59, %v290_v1 }
  0xef   : > { %v297_v5 = vsel %vm295_vm7, %v296_v2, %v294_v3 }
  0xf0   : > { %v302_v6 = vmul.f32 %v300_v0, %v297_v5  ;;  %v304_v7 = vsel %vm303_vm8, %v301_v4, 0.0 }
  0xf2   : > { %v305_v8 = vsel %vm303_vm8, %v302_v6, 0.0 }
  0xf3   : > { %v306_v9 = vadd.f32 %v305_v8, %v304_v7 }
  0xf5   : > { %307 = vadd.xlane.f32.xlu0 %v306_v9 }
 0x17e   : > { %v308_v10 = vpop.xlane.xlu0 %307 }
 0x17f   : > { %v309_v11 = vrot.slane %v308_v10, 4 }
 0x181   : > { %v310_v12 = vadd.f32 %v309_v11, %v308_v10 }
 0x183   : > { %v311_v13 = vrot.slane %v310_v12, 2 }
 0x185   : > { %v312_v14 = vadd.f32 %v311_v13, %v310_v12 }
 0x187   : > { %v313_v15 = vrot.slane %v312_v14, 1 }
 0x189   : > { %v314_v16 = vadd.f32 %v313_v15, %v312_v14 }
 0x18b   : > { %430 = vpush %v314_v16 }
 0x1bc   : > { %s431_s6 = spop %430 }
 0x1bd   : > { %s316_s25 = sadd.f32 %s431_s6, %s298_s4 }
 0x1bf   : > { %318 = sst [smem:[#allocation2]] %s316_s25  ;;  %s324_s9 = smul.f32 0.0009765625, %s316_s25 }
 0x1c1   : > { %439 = sst [smem:[#allocation8]] (%p453_p11), %s324_s9 }
 0x1c2   : > { %441 = dma.smem_to_hbm (%p453_p11), %s619_s15, 16, %s805_s2, [#allocation5]  }
 0x1c3   : > { %591 = dma.done.wait (%p453_p11), [#allocation5], 16  }
 0x1c4   : > { %593 = vsyncadd (%p453_p11), [#allocation5], 4294967280 }
 0x1c5   : > { %340 = sfence }
 0x1c6 PF: > { %p16_p9 = scmp.ge.s32.totalorder %s655_s14, 6   ;;  %s815_s9 = smov %s600_s10 }
 0x1c7   : > { %s816_s10 = smov %s604_s11  ;;  %s817_s11 = smov %s665_s17 }
 0x1c8   : > { %s818_s12 = smov %s655_s14  ;;  %18 = sbr.rel (!%p16_p9) target bundleno = 6 (0x6), region = 89 }
 0x1cd   :  { %346 = vsyncpa [#allocation4], 1 }
 0x1ce   :  { %348 = vsyncpa [#allocation4 + $0x1], 1 }
 0x1cf   :  { %349 = vsyncpa [#allocation7], 1 }
 0x1d0   :  { %351 = vsyncpa [#allocation7 + $0x1], 1 }
 0x1d1   :  { %352 = vsyncpa [#allocation5], 1 }
 0x1d2   :  { %354 = vsyncpa [#allocation5 + $0x1], 1 }

</bundles_post_ra>
